<compile_context>
chip_gen: v7x
topology: tpu7x:2x2x1
jax: 0.10.0
libtpu: 0.0.40
codegen_flags: <defaults>
</compile_context>

<pallas_src>
import jax
import jax.numpy as jnp
from jax import lax
from jax.experimental import pallas as pl
from jax.experimental.pallas import tpu as pltpu


# ----------------------------------------------------------------------------- kernel
def simple_nn_kernel(x_ref, w1_ref, b1_ref, w2_ref, b2_ref, w3_ref, b3_ref, o_ref):
    """Fused 3-layer MLP forward for one (bm, D) batch tile, computed transposed.

    Shapes inside the kernel (bm = batch tile rows, D = input features):
      x_ref  : (bm, D)      w1_ref : (16, D)   b1_ref : (16, 1)
      w2_ref : (8, 16)      b2_ref : (8, 1)
      w3_ref : (8, 1)       b3_ref : (1, 1)
      o_ref  : (1, bm)      (lane-dense output slab)
    """
    x = x_ref[...]
    if x.dtype != w1_ref.dtype:
        # Only cast when the producer did not already hand us the MXU dtype.
        x = x.astype(w1_ref.dtype)

    # layer1: h1^T = W1 @ x^T -> (16, bm).  "NT" contraction (both last dims),
    # f32 accumulation on the MXU.
    h1t = lax.dot_general(
        w1_ref[...], x,
        dimension_numbers=(((1,), (1,)), ((), ())),
        preferred_element_type=jnp.float32)
    h1t = jnp.maximum(h1t + b1_ref[...], 0.0)          # bias + ReLU in f32
    # dropout = identity (eval mode)

    # layer2: h2^T = W2 @ h1^T -> (8, bm)
    h2t = jnp.dot(w2_ref[...], h1t.astype(w2_ref.dtype),
                  preferred_element_type=jnp.float32)
    h2t = jnp.maximum(h2t + b2_ref[...], 0.0)
    # dropout = identity (eval mode)

    # layer3 (out_features=1): keep it off the MXU — VPU multiply + sublane reduce.
    out_t = jnp.sum(h2t * w3_ref[...], axis=0, keepdims=True) + b3_ref[...]   # (1, bm)
    o_ref[...] = out_t.astype(o_ref.dtype)


# ----------------------------------------------------------------------------- wrapper
def _round_up(n, m):
    return ((n + m - 1) // m) * m


def _batch_dimension_semantics(core_parallel, grid_steps):
    """Pick the grid semantics for the batch axis.

    On v7x (2 TensorCores/chip) plain "parallel" is a near-no-op; CORE_PARALLEL
    actually splits the grid steps across both cores.  Other generations keep
    PARALLEL (safe no-op hint).
    """
    if core_parallel is None:
        try:
            kind = jax.devices()[0].device_kind.lower()
        except Exception:  # pragma: no cover - no devices at trace time
            kind = ""
        core_parallel = (grid_steps > 1) and ("v7" in kind)
    return (pltpu.CORE_PARALLEL,) if core_parallel else (pltpu.PARALLEL,)


def simple_nn_forward(x, params, *, block_rows=8192, core_parallel=None):
    """Batch-tiled fused forward.  Returns (B, 1) float32, like the PyTorch module.

    block_rows: batch-tile size.  8192-16384 is the sweet spot for large batches
    (amortizes per-grid-step overhead while the double-buffered, lane-padded x
    tile stays well inside v7x's 64 MiB VMEM).  Ragged B is handled by padding
    up to a multiple of the tile and slicing the result.
    """
    w1, b1, w2, b2, w3, b3 = params
    B, D = x.shape

    # --- batch tile selection -------------------------------------------------
    if B > block_rows:
        # Multi-step grid: bm must be a multiple of 128 so the (1, bm) output
        # block is lane-dense (unmasked wide stores).
        bm = _round_up(block_rows, 128)
    else:
        # Single step covering the whole (padded) batch.
        bm = _round_up(max(B, 8), 8)
    B_pad = _round_up(B, bm)
    if B_pad != B:
        # Zero rows flow through the MLP harmlessly; their outputs are sliced off.
        x = jnp.pad(x, ((0, B_pad - B), (0, 0)))
    grid_steps = B_pad // bm

    # --- explicit VMEM budget (x tile is lane-padded to 128 lanes, 2x buffered)
    lane = 128
    x_buf_bytes = 2 * bm * _round_up(D, lane) * x.dtype.itemsize
    o_buf_bytes = 2 * 8 * _round_up(bm, lane) * 4
    vmem_limit = x_buf_bytes + o_buf_bytes + (4 << 20)          # + margin for weights/internal
    vmem_limit = int(min(max(vmem_limit, 16 << 20), 128 << 20))

    # --- cost hint for XLA's scheduler ----------------------------------------
    param_bytes = sum(int(p.size) * p.dtype.itemsize for p in params)
    cost = pl.CostEstimate(
        flops=2 * B_pad * (D * 16 + 16 * 8 + 8),
        transcendentals=0,
        bytes_accessed=B_pad * D * x.dtype.itemsize + B_pad * 4 + param_bytes)

    vmem = pltpu.MemorySpace.VMEM
    resident = lambda a: pl.BlockSpec(a.shape, lambda i: (0, 0), memory_space=vmem)

    out_t = pl.pallas_call(
        simple_nn_kernel,
        out_shape=jax.ShapeDtypeStruct((1, B_pad), jnp.float32),
        grid=(grid_steps,),
        in_specs=[
            pl.BlockSpec((bm, D), lambda i: (i, 0), memory_space=vmem),   # streamed x tile
            resident(w1), resident(b1),
            resident(w2), resident(b2),
            resident(w3), resident(b3),
        ],
        out_specs=pl.BlockSpec((1, bm), lambda i: (0, i), memory_space=vmem),
        compiler_params=pltpu.CompilerParams(
            dimension_semantics=_batch_dimension_semantics(core_parallel, grid_steps),
            vmem_limit_bytes=vmem_limit),
        cost_estimate=cost,
    )(x, w1, b1, w2, b2, w3, b3)

    return out_t[:, :B].reshape(B, 1)


# ----------------------------------------------------------------------------- params / reference
def init_params(key, input_size, *, matmul_dtype=jnp.bfloat16):
    """Deterministic parameter init, native PyTorch (out_features, in_features) layout.

    Keep w1/w2 in bf16 on ALL generations (v5e/v6e/v7x MXUs all take bf16
    natively with f32 accumulation; only element-wise units lack bf16 on v5e,
    and all element-wise math here is already f32).  Pass
    matmul_dtype=jnp.float32 only if you need exact-f32 matmul math.
    """
    k1, k2, k3, k4, k5, k6 = jax.random.split(key, 6)
    w1 = (jax.random.normal(k1, (16, input_size), jnp.float32) * 0.1).astype(matmul_dtype)
    b1 = jax.random.normal(k2, (16, 1), jnp.float32) * 0.01
    w2 = (jax.random.normal(k3, (8, 16), jnp.float32) * 0.1).astype(matmul_dtype)
    b2 = jax.random.normal(k4, (8, 1), jnp.float32) * 0.01
    w3 = jax.random.normal(k5, (8, 1), jnp.float32) * 0.1    # = layer3.weight.T
    b3 = jax.random.normal(k6, (1, 1), jnp.float32) * 0.01
    return (w1, b1, w2, b2, w3, b3)


def reference_forward(x, params):
    """Pure-JAX reference using the identical (transposed, mixed-precision) math."""
    w1, b1, w2, b2, w3, b3 = params
    xc = x.astype(w1.dtype)
    h1t = jnp.maximum(
        lax.dot_general(w1, xc, dimension_numbers=(((1,), (1,)), ((), ())),
                        preferred_element_type=jnp.float32) + b1, 0.0)      # (16, B)
    h2t = jnp.maximum(
        jnp.dot(w2, h1t.astype(w2.dtype),
                preferred_element_type=jnp.float32) + b2, 0.0)              # (8, B)
    out_t = jnp.sum(h2t * w3, axis=0, keepdims=True) + b3                   # (1, B)
    return out_t.reshape(-1, 1)                                             # (B, 1)


# ----------------------------------------------------------------------------- demo
if __name__ == "__main__":
    key = jax.random.PRNGKey(0)
    kx, kp = jax.random.split(key)

    # Small demo shapes; batch=300 with block_rows=128 exercises the streaming
    # grid (3 steps) AND the ragged-batch pad-and-slice path (300 -> 384).
    batch = 300
    input_size = 32    # stands in for X_train_scaled.shape[1]

    x = jax.random.normal(kx, (batch, input_size), jnp.float32)
    params = init_params(kp, input_size)

    out = jax.block_until_ready(simple_nn_forward(x, params, block_rows=128))
    ref = reference_forward(x, params)

    assert out.shape == (batch, 1), out.shape
    assert jnp.allclose(out, ref, atol=2e-3, rtol=2e-3), "mismatch vs reference"

    print("KERNEL_OK")
</pallas_src>

<mosaic_0001>
module attributes {stable_mosaic.version = 11 : i64} {
  func.func @simple_nn_kernel(%arg0: i32, %arg1: memref<128x32xf32, #tpu.memory_space<vmem>>, %arg2: memref<16x32xbf16, #tpu.memory_space<vmem>>, %arg3: memref<16x1xf32, #tpu.memory_space<vmem>>, %arg4: memref<8x16xbf16, #tpu.memory_space<vmem>>, %arg5: memref<8x1xf32, #tpu.memory_space<vmem>>, %arg6: memref<8x1xf32, #tpu.memory_space<vmem>>, %arg7: memref<1x1xf32, #tpu.memory_space<vmem>>, %arg8: memref<1x128xf32, #tpu.memory_space<vmem>>) attributes {dimension_semantics = [#tpu.dimension_semantics<parallel>], iteration_bounds = array<i64: 3>, scalar_prefetch = 0 : i64, scratch_operands = 0 : i64, tpu.core_type = #tpu.core_type<tc>, window_params = [{transform_indices = @transform_0, window_bounds = array<i64: 128, 32>}, {pipeline_mode = #tpu.pipeline_mode<synchronous>, transform_indices = @transform_1, window_bounds = array<i64: 16, 32>}, {pipeline_mode = #tpu.pipeline_mode<synchronous>, transform_indices = @transform_2, window_bounds = array<i64: 16, 1>}, {pipeline_mode = #tpu.pipeline_mode<synchronous>, transform_indices = @transform_3, window_bounds = array<i64: 8, 16>}, {pipeline_mode = #tpu.pipeline_mode<synchronous>, transform_indices = @transform_4, window_bounds = array<i64: 8, 1>}, {pipeline_mode = #tpu.pipeline_mode<synchronous>, transform_indices = @transform_5, window_bounds = array<i64: 8, 1>}, {pipeline_mode = #tpu.pipeline_mode<synchronous>, transform_indices = @transform_6, window_bounds = array<i64: 1, 1>}, {transform_indices = @transform_7, window_bounds = array<i64: 1, 128>}]} {
    %c0 = arith.constant 0 : index
    %c0_0 = arith.constant 0 : index
    %0 = vector.load %arg1[%c0, %c0_0] : memref<128x32xf32, #tpu.memory_space<vmem>>, vector<128x32xf32>
    %1 = arith.truncf %0 : vector<128x32xf32> to vector<128x32xbf16>
    %c0_1 = arith.constant 0 : index
    %c0_2 = arith.constant 0 : index
    %2 = vector.load %arg2[%c0_1, %c0_2] : memref<16x32xbf16, #tpu.memory_space<vmem>>, vector<16x32xbf16>
    %cst = arith.constant dense<0.000000e+00> : vector<16x128xf32>
    %3 = tpu.matmul %2, %1, %cst {dimension_numbers = #tpu.dot_dimension_numbers<[1], [1], [0], [0], [0, 0, 1, 0], [], []>} : vector<16x32xbf16>, vector<128x32xbf16>, vector<16x128xf32> -> vector<16x128xf32>
    %c0_3 = arith.constant 0 : index
    %c0_4 = arith.constant 0 : index
    %4 = vector.load %arg3[%c0_3, %c0_4] : memref<16x1xf32, #tpu.memory_space<vmem>>, vector<16x1xf32>
    %5 = vector.broadcast %4 : vector<16x1xf32> to vector<16x128xf32>
    %6 = arith.addf %3, %5 : vector<16x128xf32>
    %cst_5 = arith.constant 0.000000e+00 : f32
    %7 = vector.broadcast %cst_5 : f32 to vector<16x128xf32>
    %8 = arith.maximumf %6, %7 : vector<16x128xf32>
    %c0_6 = arith.constant 0 : index
    %c0_7 = arith.constant 0 : index
    %9 = vector.load %arg4[%c0_6, %c0_7] : memref<8x16xbf16, #tpu.memory_space<vmem>>, vector<8x16xbf16>
    %10 = arith.truncf %8 : vector<16x128xf32> to vector<16x128xbf16>
    %cst_8 = arith.constant dense<0.000000e+00> : vector<8x128xf32>
    %11 = tpu.matmul %9, %10, %cst_8 {dimension_numbers = #tpu.dot_dimension_numbers<[1], [0], [0], [1], [0, 0, 1, 1], [], []>} : vector<8x16xbf16>, vector<16x128xbf16>, vector<8x128xf32> -> vector<8x128xf32>
    %c0_9 = arith.constant 0 : index
    %c0_10 = arith.constant 0 : index
    %12 = vector.load %arg5[%c0_9, %c0_10] : memref<8x1xf32, #tpu.memory_space<vmem>>, vector<8x1xf32>
    %13 = vector.broadcast %12 : vector<8x1xf32> to vector<8x128xf32>
    %14 = arith.addf %11, %13 : vector<8x128xf32>
    %cst_11 = arith.constant 0.000000e+00 : f32
    %15 = vector.broadcast %cst_11 : f32 to vector<8x128xf32>
    %16 = arith.maximumf %14, %15 : vector<8x128xf32>
    %c0_12 = arith.constant 0 : index
    %c0_13 = arith.constant 0 : index
    %17 = vector.load %arg6[%c0_12, %c0_13] : memref<8x1xf32, #tpu.memory_space<vmem>>, vector<8x1xf32>
    %18 = vector.broadcast %17 : vector<8x1xf32> to vector<8x128xf32>
    %19 = arith.mulf %16, %18 : vector<8x128xf32>
    %cst_14 = arith.constant dense<0.000000e+00> : vector<128xf32>
    %20 = vector.multi_reduction <add>, %19, %cst_14 [0] : vector<8x128xf32> to vector<128xf32>
    %21 = vector.shape_cast %20 : vector<128xf32> to vector<1x128xf32>
    %c0_15 = arith.constant 0 : index
    %c0_16 = arith.constant 0 : index
    %22 = vector.load %arg7[%c0_15, %c0_16] : memref<1x1xf32, #tpu.memory_space<vmem>>, vector<1x1xf32>
    %23 = vector.broadcast %22 : vector<1x1xf32> to vector<1x128xf32>
    %24 = arith.addf %21, %23 : vector<1x128xf32>
    %c0_17 = arith.constant 0 : index
    %c0_18 = arith.constant 0 : index
    %25 = vector.load %arg8[%c0_17, %c0_18] : memref<1x128xf32, #tpu.memory_space<vmem>>, vector<1x128xf32>
    tpu.vector_store %arg8[%c0_17, %c0_18], %24 {strides = array<i32>} : memref<1x128xf32, #tpu.memory_space<vmem>>, vector<1x128xf32>,
    return
  }
  func.func @transform_0(%arg0: i32) -> (i32, i32) {
    %c0_i32 = arith.constant 0 : i32
    %c0_i32_0 = arith.constant 0 : i32
    return %arg0, %c0_i32 : i32, i32
  }
  func.func @transform_1(%arg0: i32) -> (i32, i32) {
    %c0_i32 = arith.constant 0 : i32
    %c0_i32_0 = arith.constant 0 : i32
    %c0_i32_1 = arith.constant 0 : i32
    return %c0_i32, %c0_i32_0 : i32, i32
  }
  func.func @transform_2(%arg0: i32) -> (i32, i32) {
    %c0_i32 = arith.constant 0 : i32
    %c0_i32_0 = arith.constant 0 : i32
    %c0_i32_1 = arith.constant 0 : i32
    return %c0_i32, %c0_i32_0 : i32, i32
  }
  func.func @transform_3(%arg0: i32) -> (i32, i32) {
    %c0_i32 = arith.constant 0 : i32
    %c0_i32_0 = arith.constant 0 : i32
    %c0_i32_1 = arith.constant 0 : i32
    return %c0_i32, %c0_i32_0 : i32, i32
  }
  func.func @transform_4(%arg0: i32) -> (i32, i32) {
    %c0_i32 = arith.constant 0 : i32
    %c0_i32_0 = arith.constant 0 : i32
    %c0_i32_1 = arith.constant 0 : i32
    return %c0_i32, %c0_i32_0 : i32, i32
  }
  func.func @transform_5(%arg0: i32) -> (i32, i32) {
    %c0_i32 = arith.constant 0 : i32
    %c0_i32_0 = arith.constant 0 : i32
    %c0_i32_1 = arith.constant 0 : i32
    return %c0_i32, %c0_i32_0 : i32, i32
  }
  func.func @transform_6(%arg0: i32) -> (i32, i32) {
    %c0_i32 = arith.constant 0 : i32
    %c0_i32_0 = arith.constant 0 : i32
    %c0_i32_1 = arith.constant 0 : i32
    return %c0_i32, %c0_i32_0 : i32, i32
  }
  func.func @transform_7(%arg0: i32) -> (i32, i32) {
    %c0_i32 = arith.constant 0 : i32
    %c0_i32_0 = arith.constant 0 : i32
    return %c0_i32, %arg0 : i32, i32
  }
}

</mosaic_0001>

<bundles_post_ra>
// kernel: tpu_custom_call.1
= control target key start
LH: loop header
LB: loop body
LE: loop exit
PB: predicated region body
PF: predicated region fallthrough
CT: control target
= control target key end

     0   :  { %s890_s0 = inlined_call_operand.vmem [shape: f32[384,32], index: 0, kind: input, shape index: {}]   ;;  %s891_s1 = inlined_call_operand.vmem [shape: bf16[16,32], index: 1, kind: input, shape index: {}]   ;;  %s892_s2 = inlined_call_operand.vmem [shape: f32[16,1], index: 2, kind: input, shape index: {}]   ;;  %s893_s3 = inlined_call_operand.vmem [shape: bf16[8,16], index: 3, kind: input, shape index: {}]   ;;  %s894_s4 = inlined_call_operand.vmem [shape: f32[8,1], index: 4, kind: input, shape index: {}]   ;;  %s895_s5 = inlined_call_operand.vmem [shape: f32[8,1], index: 5, kind: input, shape index: {}]   ;;  %s896_s6 = inlined_call_operand.<no memory space> [shape: f32[1,1], index: 6, kind: input, shape index: {}]   ;;  %s897_s7 = inlined_call_operand.hbm [shape: f32[1,384], index: 7, kind: output, shape index: {}]  }
   0x1   :  { %v12_v0 = vstv %s896_s6 }
   0x2   :  { %13 = vst [vmem:[#allocation2] sm:$0x1] %v12_v0 }
   0x3   :  { %14 = vsyncpa [#allocation4], 0 }
   0x4   :  { %16 = vsyncpa [#allocation4 + $0x1], 0  ;;  %s746_s26 = smov 0   ;;  %s748_s27 = smov 0  }
   0x5   :  { %s750_s28 = smov 0   ;;  %s752_s29 = smov 0  }
   0x6 LB: > { %s540_s6 = sadd.s32 4294967295, %s697_s29   ;;  %s541_s30 = sadd.s32 4294967294, %s697_s29   ;;  %s697_s29 = sphi %s752_s29, %s903_s29   ;;  %s693_s28 = sphi %s750_s28, %s902_s28   ;;  %s689_s27 = sphi %s748_s27, %s901_s27   ;;  %s685_s26 = sphi %s746_s26, %s900_s26  }
   0x7   : > { %s769_s8 = sadd.s32 1, %s697_s29   ;;  %s181_s9 = sadd.s32 1, %s693_s28 }
   0x8   : > { %s178_s10 = ssub.s32 %s697_s29, %s769_s8  ;;  %p191_p0 = scmp.ne.s32.totalorder %s693_s28, %s689_s27 }
   0x9   : > { %p179_p1 = scmp.eq.s32.totalorder %s178_s10, 0  ;;  %p192_p2 = scmp.eq.s32.totalorder %s540_s6, 2 }
   0xa   : > { %p197_p3 = scmp.ne.s32.totalorder %s689_s27, %s685_s26  ;;  %p198_p4 = scmp.eq.s32.totalorder %s541_s30, 2 }
   0xb   : > { %s779_s11 = scalar_select %p179_p1, %s693_s28, %s181_s9  }
   0xc   : > { %p781_p5 = por %p192_p2, %p191_p0  ;;  %p785_p6 = por %p198_p4, %p197_p3 }
   0xd   : > { %p544_p7 = scmp.ge.s32.totalorder %s697_s29, 1  ;;  %p243_p8 = scmp.lt.s32.totalorder %s697_s29, 4 }
   0xf   : > { %p244_p9 = pnand %p544_p7, %p243_p8 }
  0x10   : > { %s791_s14 = sshll.u32 (!%p244_p9), %s540_s6, 4  ;;  %v699_v1 = vmov (!%p244_p9), 0.0   ;;  %vm700_vm0 = vmmov (!%p244_p9), 0   ;;  %v307_v2 = vld [vmem:[%s892_s2] sm:$0xff] (!%p244_p9)  ;;  %v701_v3 = vmov (!%p244_p9), 0   ;;  %v308_v4 = vld [vmem:[%s892_s2 + $0x8] sm:$0xff] (!%p244_p9)  ;;  %v467_v61 = vlaneseq (!%p244_p9) }
  0x11   : > { %247 = sbr.rel (%p244_p9) target bundleno = 564 (0x234), region = 48  ;;  %564 = vmatprep.subr.bf16.mxu0 (!%p244_p9), %v699_v1  ;;  %p275_p10 = scmp.lt.s32.totalorder (!%p244_p9), %s791_s14, 47  ;;  %580 = vmatprep.mubr.msk.bf16.mxu0 (!%p244_p9), %vm700_vm0, %v699_v1  ;;  %vm324_vm1 = vcmask (!%p244_p9), 261120   ;;  %v461_v8 = vld [vmem:[#allocation2] sm:$0x1] (!%p244_p9)  ;;  %vm403_vm2 = vcmask (!%p244_p9), 130048  }
  0x12   : > { %632 = vset.pattern.permute.xlu0 (!%p244_p9), %v701_v3  ;;  %584 = vmatprep.subr.bf16.mxu1 (!%p244_p9), %v699_v1  ;;  %v634_v38 = vld [vmem:[%s891_s1] sm:$0xff] (!%p244_p9)   ;;  %v468_v0 = vshrl.u32 (!%p244_p9), %v467_v61, 7  ;;  %s848_s22 = scalar_lea.hbm (!%p244_p9), %s897_s7, %s791_s14  ;;  %s702_s25 = smov (!%p244_p9), [#allocation3]  }
  0x13   : > { %311 = vperm.xlu0 (!%p244_p9), %632, %v307_v2   ;;  %586 = vmatprep.mubr.msk.bf16.mxu1 (!%p244_p9), %vm700_vm0, %v699_v1  ;;  %v397_v39 = vld [vmem:[%s894_s4] sm:$0xff] (!%p244_p9)  ;;  %s639_s6 = sshll.u32 (!%p244_p9), %s702_s25, 4  ;;  %s640_s6 = int_to_ptr.vmem [resolvable:$false] %s639_s6 }
  0x14   : > { %633 = vset.pattern.permute.xlu1 (!%p244_p9), %v701_v3  ;;  %v448_v40 = vld [vmem:[%s895_s5] sm:$0xff] (!%p244_p9)  ;;  %v469_v3 = vsub.s32 (!%p244_p9), 0, %v468_v0  ;;  %s641_s30 = scalar_lea.vmem (!%p244_p9), %s640_s6, 32 }
  0x15   : > { %400 = vperm.xlu1 (!%p244_p9), %633, %v397_v39   ;;  %v395_v52 = vld [vmem:[%s893_s3] sm:$0xf] (!%p244_p9) }
  0x17   : > { %316 = vperm.xlu0 (!%p244_p9), %632, %v308_v4  }
  0x18   : > { %s276_s17 = scalar_select %p275_p10, %s791_s14, 47 }
  0x19   : > { %451 = vperm.xlu1 %633, %v448_v40  }
  0x1a   : > { %s546_s20 = sshll.u32 %s276_s17, 3  ;;  %s272_s17 = sand.u32 1, %s689_s27  }
  0x1b   : > { %s804_s23 = scalar_lea.vmem %s890_s0, %s546_s20  ;;  %464 = vperm.xlu0 %632, %v461_v8   ;;  %s273_s18 = scalar_lea.vmem [#allocation3], %s272_s17 }
  0x1c   : > { %v281_v5 = vld [vmem:[%s804_s23] sm:$0xff]  ;;  %v282_v6 = vld [vmem:[%s804_s23 + $0x8] sm:$0xff]  ;;  %v283_v9 = vld [vmem:[%s804_s23 + $0x10] sm:$0xff]  ;;  %s486_s19 = sshll.u32 %s273_s18, 4  ;;  %s850_s19 = int_to_ptr.vmem [resolvable:$true] %s486_s19 }
  0x1d   : > { %v297_v7 = vpack.c.bf16 %v282_v6, %v281_v5  ;;  %v284_v10 = vld [vmem:[%s804_s23 + $0x18] sm:$0xff]  ;;  %v285_v14 = vld [vmem:[%s804_s23 + $0x20] sm:$0xff]  ;;  %v286_v15 = vld [vmem:[%s804_s23 + $0x28] sm:$0xff]  ;;  %s635_s24 = scalar_lea.vmem %s850_s19, 16  ;;  %p642_p0 = scmp.lt.s32.totalorder %s850_s19, %s640_s6 }
  0x1e   : > { %v298_v12 = vpack.c.bf16 %v284_v10, %v283_v9  ;;  %v299_v16 = vpack.c.bf16 %v286_v15, %v285_v14  ;;  %v287_v18 = vld [vmem:[%s804_s23 + $0x30] sm:$0xff]  ;;  %v288_v19 = vld [vmem:[%s804_s23 + $0x38] sm:$0xff]  ;;  %v289_v22 = vld [vmem:[%s804_s23 + $0x40] sm:$0xff]  ;;  %p636_p11 = scmp.ne.s32.totalorder %s850_s19, %s635_s24  ;;  %p643_p1 = scmp.lt.s32.totalorder %s641_s30, %s635_s24 }
  0x1f   : > { %v329_v11 = vsel %vm324_vm1, %v297_v7, 0  ;;  %v300_v20 = vpack.c.bf16 %v288_v19, %v287_v18  ;;  %v290_v23 = vld [vmem:[%s804_s23 + $0x48] sm:$0xff]  ;;  %v291_v26 = vld [vmem:[%s804_s23 + $0x50] sm:$0xff]  ;;  %v292_v27 = vld [vmem:[%s804_s23 + $0x58] sm:$0xff] }
  0x20   : > { %565 = vmatpush3.bf16.xpose.msra.mxu0 %v329_v11  ;;  %v332_v13 = vsel %vm324_vm1, %v298_v12, 0  ;;  %v335_v17 = vsel %vm324_vm1, %v299_v16, 0  ;;  %v301_v24 = vpack.c.bf16 %v290_v23, %v289_v22  ;;  %v302_v28 = vpack.c.bf16 %v292_v27, %v291_v26  ;;  %v293_v30 = vld [vmem:[%s804_s23 + $0x60] sm:$0xff]  ;;  %v294_v31 = vld [vmem:[%s804_s23 + $0x68] sm:$0xff]  ;;  %v295_v34 = vld [vmem:[%s804_s23 + $0x70] sm:$0xff]  ;;  %p637_p12 = pnand %p636_p11, %p781_p5  ;;  %p644_p2 = por %p643_p1, %p642_p0 }
  0x21   : > { %566 = vmatprep.subr.bf16.mxu0 %v699_v1  ;;  %v338_v21 = vsel %vm324_vm1, %v300_v20, 0  ;;  %v303_v32 = vpack.c.bf16 %v294_v31, %v293_v30  ;;  %v296_v35 = vld [vmem:[%s804_s23 + $0x78] sm:$0xff]  ;;  %s474_s23 = scalar_lea.sflag [#allocation4], %s272_s17 }
  0x22   : > { %v341_v25 = vsel %vm324_vm1, %v301_v24, 0  ;;  %v344_v29 = vsel %vm324_vm1, %v302_v28, 0  ;;  %v304_v36 = vpack.c.bf16 %v296_v35, %v295_v34  ;;  %p638_p13 = pneg %p637_p12 }
  0x23   : > { %v347_v33 = vsel %vm324_vm1, %v303_v32, 0 }
  0x24   : > { %v350_v37 = vsel %vm324_vm1, %v304_v36, 0  ;;  %p645_p3 = pnand %p644_p2, %p638_p13 }
  0x28   : > { %567 = vmatpush3.bf16.xpose.msra.mxu0 %v332_v13 }
  0x29   : > { %568 = vmatprep.subr.bf16.mxu0 %v699_v1 }
  0x30   : > { %569 = vmatpush3.bf16.xpose.msra.mxu0 %v335_v17 }
  0x31   : > { %570 = vmatprep.subr.bf16.mxu0 %v699_v1 }
  0x38   : > { %571 = vmatpush3.bf16.xpose.msra.mxu0 %v338_v21 }
  0x39   : > { %572 = vmatprep.subr.bf16.mxu0 %v699_v1 }
  0x40   : > { %573 = vmatpush3.bf16.xpose.msra.mxu0 %v341_v25 }
  0x41   : > { %574 = vmatprep.subr.bf16.mxu0 %v699_v1 }
  0x48   : > { %575 = vmatpush3.bf16.xpose.msra.mxu0 %v344_v29 }
  0x49   : > { %576 = vmatprep.subr.bf16.mxu0 %v699_v1 }
  0x50   : > { %577 = vmatpush3.bf16.xpose.msra.mxu0 %v347_v33 }
  0x51   : > { %578 = vmatprep.subr.bf16.mxu0 %v699_v1 }
  0x58   : > { %579 = vmatpush3.bf16.xpose.msra.mxu0 %v350_v37 }
  0x5f   : > { %581 = vmatmul.mubr.msk.bf16.vlgmr.msra.gmra.mrb[0].mxu0 %vm324_vm1, %v634_v38 }
  0x92   : > { %v312_v41 = vpop.permute.xlu0 %311 }
  0x94   : > { %v401_v53 = vpop.permute.xlu1 %400 }
  0x96   : > { %v317_v45 = vpop.permute.xlu0 %316 }
  0x98   : > { %v452_v60 = vpop.permute.xlu1 %451 }
  0x9a   : > { %v465_v5 = vpop.permute.xlu0 %464 }
  0x9b   : > { %v470_v7 = vrot.slane %v465_v5, %v469_v3 }
 0x132   : > { %v386_v42 = vpop.f32.mrb[0].mxu0 }
 0x133   : > { %v387_v43 = vadd.f32 %v386_v42, %v312_v41  ;;  %v582_v44 = vpop.f32.mrb[1].mxu0 }
 0x134   : > { %v389_v46 = vpop.f32.mrb[2].mxu0 }
 0x135   : > { %v390_v47 = vadd.f32 %v389_v46, %v317_v45  ;;  %v583_v48 = vpop.f32.mrb[3].mxu0  ;;  %v393_v49 = vmax.f32 %v387_v43, 0.0 }
 0x137   : > { %v394_v50 = vmax.f32 %v390_v47, 0.0 }
 0x139   : > { %v396_v51 = vpack.c.bf16 %v394_v50, %v393_v49 }
 0x13b   : > { %585 = vmatpush3.bf16.msra.mxu1 %v396_v51 }
 0x13e   : > { %587 = vmatmul.mubr.msk.bf16.vlgmr.msra.gmra.mrb[0].mxu1 %vm403_vm2, %v395_v52 }
 0x211   : > { %v441_v54 = vpop.f32.mrb[0].mxu1 }
 0x212   : > { %v442_v55 = vadd.f32 %v441_v54, %v401_v53  ;;  %v588_v56 = vpop.f32.mrb[1].mxu1 }
 0x213   : > { %v444_v57 = vpop.f32.mrb[2].mxu1 }
 0x214   : > { %v447_v58 = vmax.f32 %v442_v55, 0.0  ;;  %v589_v59 = vpop.f32.mrb[3].mxu1 }
 0x216   : > { %v454_v62 = vmul.f32 %v452_v60, %v447_v58 }
 0x218   : > { %v455_v63 = vrot.slane %v454_v62, 4 }
 0x21a   : > { %v456_v1 = vadd.f32 %v455_v63, %v454_v62 }
 0x21c   : > { %v457_v2 = vrot.slane %v456_v1, 2 }
 0x21e   : > { %v458_v4 = vadd.f32 %v457_v2, %v456_v1 }
 0x220   : > { %v459_v6 = vrot.slane %v458_v4, 1 }
 0x222   : > { %v460_v8 = vadd.f32 %v459_v6, %v458_v4 }
 0x224   : > { %v471_v9 = vadd.f32 %v470_v7, %v460_v8 }
 0x226   : > { %472 = vst [vmem:[%s273_s18] sm:$0x1] %v471_v9 }
 0x227   : > { %648 = shalt.err (!%p645_p3)
}
 0x228   : > { %s649_s14 = scalar_lea.hbm %s848_s22, 16  ;;  %s653_s15 = scalar_lea.hbm %s897_s7, 48 }
 0x229   : > { %p650_p4 = scmp.ne.s32.totalorder %s848_s22, %s649_s14  ;;  %p654_p9 = scmp.lt.u32.totalorder %s848_s22, %s897_s7 }
 0x22a   : > { %p655_p10 = scmp.lt.u32.totalorder %s653_s15, %s649_s14  ;;  %p657_p12 = scmp.lt.u32.totalorder %s649_s14, %s848_s22 }
 0x22b   : > { %p651_p7 = pnand %p650_p4, %p781_p5 }
 0x22c   : > { %p656_p11 = por %p655_p10, %p654_p9 }
 0x22d   : > { %p652_p8 = pneg %p651_p7 }
 0x22e   : > { %p658_p13 = por %p657_p12, %p656_p11 }
 0x230   : > { %p659_p0 = pnand %p658_p13, %p652_p8 }
 0x232   : > { %662 = shalt.err (!%p659_p0)
}
 0x233   : > { %590 = dma.vmem_to_hbm [thread:$0]  (%p781_p5), %s850_s19, 16, %s848_s22, %s474_s23  }
 0x234 PF: > { %p596_p1 = scmp.ge.s32.totalorder %s697_s29, 2  ;;  %s498_s18 = sand.u32 1, %s685_s26  }
 0x235   : > { %s499_s20 = scalar_lea.sflag [#allocation4], %s498_s18 }
 0x236   : > { %p593_p2 = pnand %p596_p1, %p785_p6 }
 0x238   : > { %680 = dma.done.wait (!%p593_p2), %s499_s20, 16  }
 0x239   : > { %682 = vsyncadd (!%p593_p2), %s499_s20, 4294967280  ;;  %p19_p3 = scmp.ge.s32.totalorder %s769_s8, 5   ;;  %s900_s26 = smov %s689_s27 }
 0x23a   : > { %s901_s27 = smov %s693_s28  ;;  %s902_s28 = smov %s779_s11 }
 0x23b   : > { %s903_s29 = smov %s769_s8  ;;  %21 = sbr.rel (!%p19_p3) target bundleno = 6 (0x6), region = 83 }
 0x242   :  { %503 = vsyncpa [#allocation4], 1 }
 0x243   :  { %505 = vsyncpa [#allocation4 + $0x1], 1 }

</bundles_post_ra>
